<compile_context>
chip_gen: v7x
topology: tpu7x:2x2x1
jax: 0.10.0
libtpu: 0.0.40
codegen_flags: <defaults>
</compile_context>

<pallas_src>
import jax
import jax.numpy as jnp
from jax.experimental import pallas as pl
from jax.experimental.pallas import tpu as pltpu


def _softplus(x):
    # Stable softplus (matches F.softplus(beta=1) to well within 3e-5).
    # log(1+t) instead of log1p(t) to keep the lowering maximally vanilla.
    return jnp.maximum(x, 0.0) + jnp.log(1.0 + jnp.exp(-jnp.abs(x)))


def lrmvn_kernel(rep0t_ref, rep1t_ref, w0t_ref, w1t_ref, b_ref, eps_ref, out_ref):
    # Two small MXU pushes (no lane-axis concat).  abT: (18, TILE_B) —
    # heads on sublanes, batch on lanes.
    abT = (
        jnp.dot(w0t_ref[...], rep0t_ref[...], preferred_element_type=jnp.float32)
        + jnp.dot(w1t_ref[...], rep1t_ref[...], preferred_element_type=jnp.float32)
        + b_ref[...]                                             # (18, 1) lane-splat
    )

    # Row layout of abT:
    #   0:3  mean_mean   3:6  cf_mean   6:9  1e-6 (bias-only HalfNormal floor)
    #   9:12 mean_std'  12:15 cf_std'  15:18 cov_scale'   (' = pre-softplus)
    meanT = abT[0:9, :]                                          # (9, TILE_B)
    stdT = _softplus(abT[9:18, :])                               # (9, TILE_B)

    # eps packed as (9, S, TILE_B); rows 6:9 are the HalfNormal (cov_diag)
    # noise -> use |eps| there (HalfNormal.rsample).  bf16 -> f32 upcast here.
    eps = eps_ref[...].astype(jnp.float32)
    j = jax.lax.broadcasted_iota(jnp.int32, eps.shape, 0)
    eps = jnp.where(j >= 6, jnp.abs(eps), eps)

    # Reparameterized MC samples, one lane-dense store:
    #   rows 0:3  loc      = mean_mean + mean_std  * eps
    #   rows 3:6  cov_fac  = cf_mean   + cf_std    * eps
    #   rows 6:9  cov_diag = 1e-6      + cov_scale * |eps|
    out_ref[...] = meanT[:, None, :] + stdT[:, None, :] * eps


def fold_lrmvn_params(wa, ba, wb, bb):
    """One-time (init-time) folding of the five Linear(H, 3) heads into two
    transposed weight slabs + one bias column.

    wa/ba: [mean_mean | mean_std | cov_diag_scale] heads, (H, 9)/(9,).
    wb/bb: [cov_factor_mean | cov_factor_std] heads, (H, 6)/(6,).
    Returns w0t (18, H) applied to rep0, w1t (18, H) applied to rep1 (so that
    comb = rep0 + rep1 is realized by duplicated cov_factor rows), bias (18, 1)
    with the +1e-6 cov_diag floor folded into the (zero-weight) rows 6:9.
    """
    H = wa.shape[0]
    z = jnp.zeros((3, H), jnp.float32)
    wa_mm, wa_ms, wa_cs = wa[:, 0:3].T, wa[:, 3:6].T, wa[:, 6:9].T
    wb_cfm, wb_cfs = wb[:, 0:3].T, wb[:, 3:6].T
    w0t = jnp.concatenate([wa_mm, wb_cfm, z, wa_ms, wb_cfs, wa_cs], axis=0)  # (18, H)
    w1t = jnp.concatenate([z, wb_cfm, z, z, wb_cfs, z], axis=0)              # (18, H)
    bias = jnp.concatenate(
        [ba[0:3], bb[0:3], jnp.full((3,), 1e-6, jnp.float32),
         ba[3:6], bb[3:6], ba[6:9]]
    ).reshape(18, 1).astype(jnp.float32)
    return w0t, w1t, bias


@jax.jit
def lrmvn_forward(rep0, rep1, w0t, w1t, bias, eps_pkd):
    """rep0/rep1: (B, H) f32.  w0t/w1t: (18, H), bias: (18, 1) from
    fold_lrmvn_params.  eps_pkd: (9, S, B) bf16 standard-normal noise packed
    as rows [eps_mean(3) | eps_cov_factor(3) | eps_cov_diag(3)]."""
    B, H = rep0.shape
    nine, S, B_eps = eps_pkd.shape
    assert nine == 9 and B_eps == B

    # Batch-on-lanes layout for the in-kernel matmuls (tiny XLA transpose).
    rep0t = rep0.T                                               # (H, B)
    rep1t = rep1.T

    # TILE_B: multiple of 128 (it is the lane dim of every tiled block) or the
    # full B for small batches.  512 keeps double-buffered eps(bf16)+out(f32)
    # tiles at a few MiB — comfortably inside v7x's 32 MiB scoped VMEM while
    # amortizing per-grid-step overhead on v5e/v6e.
    tile_b = B if B <= 512 else 512
    grid = (pl.cdiv(B, tile_b),)

    out = pl.pallas_call(
        lrmvn_kernel,
        out_shape=jax.ShapeDtypeStruct((9, S, B), jnp.float32),
        grid=grid,
        in_specs=[
            pl.BlockSpec((H, tile_b), lambda i: (0, i)),         # rep0ᵀ tile
            pl.BlockSpec((H, tile_b), lambda i: (0, i)),         # rep1ᵀ tile
            pl.BlockSpec((18, H), lambda i: (0, 0)),             # w0ᵀ (resident)
            pl.BlockSpec((18, H), lambda i: (0, 0)),             # w1ᵀ (resident)
            pl.BlockSpec((18, 1), lambda i: (0, 0)),             # bias (resident)
            pl.BlockSpec((9, S, tile_b), lambda i: (0, 0, i)),   # eps tile
        ],
        out_specs=pl.BlockSpec((9, S, tile_b), lambda i: (0, 0, i)),
        compiler_params=pltpu.CompilerParams(
            dimension_semantics=("parallel",),    # 2x on v7x's 2 TCs; no-op v5e/v6e
            vmem_limit_bytes=32 << 20,            # safe on v7x's 64 MiB physical VMEM
        ),
    )(rep0t, rep1t, w0t, w1t, bias, eps_pkd)

    # Unpack to the torch LowRankMultivariateNormal parameter shapes
    # (cheap XLA transposes/reshapes on the final result).
    loc = jnp.transpose(out[0:3], (2, 1, 0)).reshape(B, S, 1, 3)
    cov_factor = jnp.transpose(out[3:6], (2, 1, 0)).reshape(B, S, 1, 3, 1)
    cov_diag = jnp.transpose(out[6:9], (2, 1, 0)).reshape(B, S, 1, 3)
    return loc, cov_factor, cov_diag


def lrmvn_reference(rep0, rep1, wa, ba, wb, bb, eps_pkd):
    """Plain-JAX reference mirroring the PyTorch forward()."""
    comb = rep0 + rep1
    a = rep0 @ wa + ba                                           # (B, 9)
    b = comb @ wb + bb                                           # (B, 6)
    mean_mean, mean_std = a[:, 0:3], jax.nn.softplus(a[:, 3:6])
    cov_scale = jax.nn.softplus(a[:, 6:9])
    cf_mean, cf_std = b[:, 0:3], jax.nn.softplus(b[:, 3:6])
    eps = jnp.transpose(eps_pkd.astype(jnp.float32), (2, 1, 0))  # (B, S, 9)
    eps_mean, eps_cf, eps_diag = eps[..., 0:3], eps[..., 3:6], eps[..., 6:9]
    loc = mean_mean[:, None, :] + mean_std[:, None, :] * eps_mean
    cf = cf_mean[:, None, :] + cf_std[:, None, :] * eps_cf
    diag = cov_scale[:, None, :] * jnp.abs(eps_diag) + 1e-6
    B, S, _ = loc.shape
    return (loc.reshape(B, S, 1, 3),
            cf.reshape(B, S, 1, 3, 1),
            diag.reshape(B, S, 1, 3))


if __name__ == "__main__":
    # Small, module-consistent shapes (module default hidden_dim=64).
    B = 2    # batch
    H = 64   # hidden_dim
    S = 8    # number_of_mc_samples (kept small for the test)

    key = jax.random.PRNGKey(0)
    k = jax.random.split(key, 7)

    rep0 = jax.random.normal(k[0], (B, H), jnp.float32)
    rep1 = jax.random.normal(k[1], (B, H), jnp.float32)

    scale = 1.0 / jnp.sqrt(jnp.float32(H))
    wa = jax.random.normal(k[2], (H, 9), jnp.float32) * scale    # mean_mean|mean_std|cov_scale
    ba = jax.random.normal(k[3], (9,), jnp.float32) * 0.1
    wb = jax.random.normal(k[4], (H, 6), jnp.float32) * scale    # cf_mean|cf_std
    bb = jax.random.normal(k[5], (6,), jnp.float32) * 0.1

    # Packed standard-normal noise, lane-dense layout (9, S, B).
    # NOTE: row order MUST be [eps_mean | eps_cov_factor | eps_cov_diag]; the
    # kernel's HalfNormal |eps| select hard-codes rows >= 6.
    eps_pkd = jax.random.normal(k[6], (9, S, B), jnp.float32).astype(jnp.bfloat16)

    # One-time weight folding (init-time, outside the jitted forward).
    w0t, w1t, bias = fold_lrmvn_params(wa, ba, wb, bb)

    loc, cov_factor, cov_diag = jax.block_until_ready(
        lrmvn_forward(rep0, rep1, w0t, w1t, bias, eps_pkd)
    )

    loc_r, cf_r, diag_r = lrmvn_reference(rep0, rep1, wa, ba, wb, bb, eps_pkd)
    assert loc.shape == (B, S, 1, 3)
    assert cov_factor.shape == (B, S, 1, 3, 1)
    assert cov_diag.shape == (B, S, 1, 3)
    assert jnp.allclose(loc, loc_r, rtol=3e-5, atol=3e-5)
    assert jnp.allclose(cov_factor, cf_r, rtol=3e-5, atol=3e-5)
    assert jnp.allclose(cov_diag, diag_r, rtol=3e-5, atol=3e-5)

    print("KERNEL_OK")
</pallas_src>

<mosaic_0001>
module attributes {stable_mosaic.version = 11 : i64} {
  func.func @lrmvn_kernel(%arg0: i32, %arg1: memref<64x2xf32, #tpu.memory_space<vmem>>, %arg2: memref<64x2xf32, #tpu.memory_space<vmem>>, %arg3: memref<18x64xf32, #tpu.memory_space<vmem>>, %arg4: memref<18x64xf32, #tpu.memory_space<vmem>>, %arg5: memref<18x1xf32, #tpu.memory_space<vmem>>, %arg6: memref<9x8x2xbf16, #tpu.memory_space<vmem>>, %arg7: memref<9x8x2xf32, #tpu.memory_space<vmem>>) attributes {dimension_semantics = [#tpu.dimension_semantics<parallel>], iteration_bounds = array<i64: 1>, scalar_prefetch = 0 : i64, scratch_operands = 0 : i64, tpu.core_type = #tpu.core_type<tc>, window_params = [{transform_indices = @transform_0, window_bounds = array<i64: 64, 2>}, {transform_indices = @transform_1, window_bounds = array<i64: 64, 2>}, {pipeline_mode = #tpu.pipeline_mode<synchronous>, transform_indices = @transform_2, window_bounds = array<i64: 18, 64>}, {pipeline_mode = #tpu.pipeline_mode<synchronous>, transform_indices = @transform_3, window_bounds = array<i64: 18, 64>}, {pipeline_mode = #tpu.pipeline_mode<synchronous>, transform_indices = @transform_4, window_bounds = array<i64: 18, 1>}, {transform_indices = @transform_5, window_bounds = array<i64: 9, 8, 2>}, {transform_indices = @transform_6, window_bounds = array<i64: 9, 8, 2>}]} {
    %c0 = arith.constant 0 : index
    %c0_0 = arith.constant 0 : index
    %0 = vector.load %arg3[%c0, %c0_0] : memref<18x64xf32, #tpu.memory_space<vmem>>, vector<18x64xf32>
    %c0_1 = arith.constant 0 : index
    %c0_2 = arith.constant 0 : index
    %1 = vector.load %arg1[%c0_1, %c0_2] : memref<64x2xf32, #tpu.memory_space<vmem>>, vector<64x2xf32>
    %cst = arith.constant dense<0.000000e+00> : vector<18x2xf32>
    %2 = tpu.matmul %0, %1, %cst {dimension_numbers = #tpu.dot_dimension_numbers<[1], [0], [0], [1], [0, 0, 1, 1], [], []>} : vector<18x64xf32>, vector<64x2xf32>, vector<18x2xf32> -> vector<18x2xf32>
    %c0_3 = arith.constant 0 : index
    %c0_4 = arith.constant 0 : index
    %3 = vector.load %arg4[%c0_3, %c0_4] : memref<18x64xf32, #tpu.memory_space<vmem>>, vector<18x64xf32>
    %c0_5 = arith.constant 0 : index
    %c0_6 = arith.constant 0 : index
    %4 = vector.load %arg2[%c0_5, %c0_6] : memref<64x2xf32, #tpu.memory_space<vmem>>, vector<64x2xf32>
    %cst_7 = arith.constant dense<0.000000e+00> : vector<18x2xf32>
    %5 = tpu.matmul %3, %4, %cst_7 {dimension_numbers = #tpu.dot_dimension_numbers<[1], [0], [0], [1], [0, 0, 1, 1], [], []>} : vector<18x64xf32>, vector<64x2xf32>, vector<18x2xf32> -> vector<18x2xf32>
    %6 = arith.addf %2, %5 : vector<18x2xf32>
    %c0_8 = arith.constant 0 : index
    %c0_9 = arith.constant 0 : index
    %7 = vector.load %arg5[%c0_8, %c0_9] : memref<18x1xf32, #tpu.memory_space<vmem>>, vector<18x1xf32>
    %8 = vector.broadcast %7 : vector<18x1xf32> to vector<18x2xf32>
    %9 = arith.addf %6, %8 : vector<18x2xf32>
    %10 = vector.extract_strided_slice %9 {offsets = [0, 0], sizes = [9, 2], strides = [1, 1]} : vector<18x2xf32> to vector<9x2xf32>
    %11 = vector.extract_strided_slice %9 {offsets = [9, 0], sizes = [9, 2], strides = [1, 1]} : vector<18x2xf32> to vector<9x2xf32>
    %cst_10 = arith.constant 0.000000e+00 : f32
    %12 = vector.broadcast %cst_10 : f32 to vector<9x2xf32>
    %13 = arith.maximumf %11, %12 : vector<9x2xf32>
    %14 = math.absf %11 : vector<9x2xf32>
    %cst_11 = arith.constant 0.000000e+00 : f32
    %15 = vector.broadcast %cst_11 : f32 to vector<9x2xf32>
    %16 = arith.subf %15, %14 : vector<9x2xf32>
    %17 = math.exp %16 : vector<9x2xf32>
    %cst_12 = arith.constant 1.000000e+00 : f32
    %18 = vector.broadcast %cst_12 : f32 to vector<9x2xf32>
    %19 = arith.addf %18, %17 : vector<9x2xf32>
    %20 = math.log %19 : vector<9x2xf32>
    %21 = arith.addf %13, %20 : vector<9x2xf32>
    %c0_13 = arith.constant 0 : index
    %c0_14 = arith.constant 0 : index
    %c0_15 = arith.constant 0 : index
    %22 = vector.load %arg6[%c0_13, %c0_14, %c0_15] : memref<9x8x2xbf16, #tpu.memory_space<vmem>>, vector<9x8x2xbf16>
    %23 = arith.extf %22 : vector<9x8x2xbf16> to vector<9x8x2xf32>
    %24 = tpu.iota {dimensions = array<i32: 0>} : vector<9x8x2xi32>
    %c6_i32 = arith.constant 6 : i32
    %25 = vector.broadcast %c6_i32 : i32 to vector<9x8x2xi32>
    %26 = arith.cmpi sge, %24, %25 : vector<9x8x2xi32>
    %27 = math.absf %23 : vector<9x8x2xf32>
    %28 = arith.select %26, %27, %23 : vector<9x8x2xi1>, vector<9x8x2xf32>
    %29 = vector.shape_cast %10 : vector<9x2xf32> to vector<9x1x2xf32>
    %30 = vector.shape_cast %21 : vector<9x2xf32> to vector<9x1x2xf32>
    %31 = vector.broadcast %30 : vector<9x1x2xf32> to vector<9x8x2xf32>
    %32 = arith.mulf %31, %28 : vector<9x8x2xf32>
    %33 = vector.broadcast %29 : vector<9x1x2xf32> to vector<9x8x2xf32>
    %34 = arith.addf %33, %32 : vector<9x8x2xf32>
    %c0_16 = arith.constant 0 : index
    %c0_17 = arith.constant 0 : index
    %c0_18 = arith.constant 0 : index
    %35 = vector.load %arg7[%c0_16, %c0_17, %c0_18] : memref<9x8x2xf32, #tpu.memory_space<vmem>>, vector<9x8x2xf32>
    tpu.vector_store %arg7[%c0_16, %c0_17, %c0_18], %34 {strides = array<i32>} : memref<9x8x2xf32, #tpu.memory_space<vmem>>, vector<9x8x2xf32>,
    return
  }
  func.func @transform_0(%arg0: i32) -> (i32, i32) {
    %c0_i32 = arith.constant 0 : i32
    %c0_i32_0 = arith.constant 0 : i32
    return %c0_i32, %arg0 : i32, i32
  }
  func.func @transform_1(%arg0: i32) -> (i32, i32) {
    %c0_i32 = arith.constant 0 : i32
    %c0_i32_0 = arith.constant 0 : i32
    return %c0_i32, %arg0 : i32, i32
  }
  func.func @transform_2(%arg0: i32) -> (i32, i32) {
    %c0_i32 = arith.constant 0 : i32
    %c0_i32_0 = arith.constant 0 : i32
    %c0_i32_1 = arith.constant 0 : i32
    return %c0_i32, %c0_i32_0 : i32, i32
  }
  func.func @transform_3(%arg0: i32) -> (i32, i32) {
    %c0_i32 = arith.constant 0 : i32
    %c0_i32_0 = arith.constant 0 : i32
    %c0_i32_1 = arith.constant 0 : i32
    return %c0_i32, %c0_i32_0 : i32, i32
  }
  func.func @transform_4(%arg0: i32) -> (i32, i32) {
    %c0_i32 = arith.constant 0 : i32
    %c0_i32_0 = arith.constant 0 : i32
    %c0_i32_1 = arith.constant 0 : i32
    return %c0_i32, %c0_i32_0 : i32, i32
  }
  func.func @transform_5(%arg0: i32) -> (i32, i32, i32) {
    %c0_i32 = arith.constant 0 : i32
    %c0_i32_0 = arith.constant 0 : i32
    %c0_i32_1 = arith.constant 0 : i32
    return %c0_i32, %c0_i32_0, %arg0 : i32, i32, i32
  }
  func.func @transform_6(%arg0: i32) -> (i32, i32, i32) {
    %c0_i32 = arith.constant 0 : i32
    %c0_i32_0 = arith.constant 0 : i32
    %c0_i32_1 = arith.constant 0 : i32
    return %c0_i32, %c0_i32_0, %arg0 : i32, i32, i32
  }
}

</mosaic_0001>

<bundles_post_ra>
// kernel: lrmvn_forward.1
= control target key start
LH: loop header
LB: loop body
LE: loop exit
PB: predicated region body
PF: predicated region fallthrough
CT: control target
= control target key end

     0   :  { %v695_v0 = vmov 0.0|0.0   ;;  %vm696_vm0 = vmmov 0   ;;  %v697_v8 = vmov 0.0   ;;  %v698_v12 = vmov 0   ;;  %s945_s1 = inlined_call_operand.vmem [shape: f32[64,2], index: 1, kind: input, shape index: {}]   ;;  %s946_s0 = inlined_call_operand.vmem [shape: f32[64,2], index: 0, kind: input, shape index: {}]   ;;  %s947_s4 = inlined_call_operand.vmem [shape: f32[18,1], index: 4, kind: input, shape index: {}]   ;;  %s948_s3 = inlined_call_operand.vmem [shape: f32[18,64], index: 3, kind: input, shape index: {}]   ;;  %s949_s2 = inlined_call_operand.vmem [shape: f32[18,64], index: 2, kind: input, shape index: {}]   ;;  %s950_s5 = inlined_call_operand.vmem [shape: bf16[9,8,2], index: 5, kind: input, shape index: {}]   ;;  %s951_s6 = inlined_call_operand.vmem [shape: f32[9,8,2], index: 6, kind: output, shape index: {}]  }
   0x1   :  { %656 = vmatprep.subr.bf16.mxu0 %v695_v0  ;;  %668 = vmatprep.subr.bf16.mxu1 %v695_v0  ;;  %v37_v1 = vld [vmem:[%s945_s1] sm:$0xff]  ;;  %v38_v2 = vld [vmem:[%s945_s1 + $0x8] sm:$0xff]  ;;  %v39_v6 = vld [vmem:[%s945_s1 + $0x10] sm:$0xff]  ;;  %vm45_vm1 = vcmask 523264   ;;  %v699_v60 = vmov 1966171168   ;;  %v305_v62 = vlaneseq }
   0x2   :  { %v26_v3 = vld [vmem:[%s946_s0] sm:$0xff]  ;;  %v657_v4 = vpack.c.bf16 %v38_v2, %v37_v1  ;;  %v27_v5 = vld [vmem:[%s946_s0 + $0x8] sm:$0xff]  ;;  %v40_v7 = vld [vmem:[%s945_s1 + $0x18] sm:$0xff]  ;;  %622 = vmatprep.mubr.msk.f32.mxu0 %vm696_vm0, %v697_v8  ;;  %647 = vmatprep.mubr.msk.f32.mxu1 %vm696_vm0, %v697_v8  ;;  %v303_v61 = vunpack.c.l.s4 %v699_v60  ;;  %vm545_vm2 = vcmask 15360  }
   0x3   :  { %v669_v9 = vpack.c.bf16 %v27_v5, %v26_v3  ;;  %v28_v10 = vld [vmem:[%s946_s0 + $0x10] sm:$0xff]  ;;  %v29_v11 = vld [vmem:[%s946_s0 + $0x18] sm:$0xff]  ;;  %686 = vset.pattern.permute.xlu1 %v698_v12  ;;  %685 = vset.pattern.permute.xlu0 %v698_v12  ;;  %v660_v13 = vpack.c.bf16 %v40_v7, %v39_v6  ;;  %v41_v15 = vld [vmem:[%s945_s1 + $0x20] sm:$0xff]  ;;  %v306_v1 = vshrl.u32 %v305_v62, 7 }
   0x4   :  { %658 = vmatpush3.bf16.msra.mxu0 %v657_v4  ;;  %v672_v14 = vpack.c.bf16 %v29_v11, %v28_v10  ;;  %v42_v16 = vld [vmem:[%s945_s1 + $0x28] sm:$0xff]  ;;  %v30_v17 = vld [vmem:[%s946_s0 + $0x20] sm:$0xff]  ;;  %v43_v23 = vld [vmem:[%s945_s1 + $0x30] sm:$0xff] }
   0x5   :  { %670 = vmatpush3.bf16.msra.mxu1 %v669_v9  ;;  %659 = vmatprep.subr.bf16.mxu0 %v695_v0  ;;  %v31_v18 = vld [vmem:[%s946_s0 + $0x28] sm:$0xff]  ;;  %v663_v19 = vpack.c.bf16 %v42_v16, %v41_v15  ;;  %v224_v21 = vld [vmem:[%s947_s4] sm:$0xff]  ;;  %v44_v24 = vld [vmem:[%s945_s1 + $0x38] sm:$0xff] }
   0x6   :  { %671 = vmatprep.subr.bf16.mxu1 %v695_v0  ;;  %v225_v20 = vld [vmem:[%s947_s4 + $0x8] sm:$0xff]  ;;  %v675_v22 = vpack.c.bf16 %v31_v18, %v30_v17  ;;  %v32_v25 = vld [vmem:[%s946_s0 + $0x30] sm:$0xff]  ;;  %v33_v26 = vld [vmem:[%s946_s0 + $0x38] sm:$0xff]  ;;  %229 = vperm.xlu1 %686, %v224_v21   ;;  %v666_v28 = vpack.c.bf16 %v44_v24, %v43_v23  ;;  %v843_v17 = vsub.s32 0, %v306_v1 }
   0x7   :  { %234 = vperm.xlu0 %685, %v225_v20   ;;  %v226_v27 = vld [vmem:[%s947_s4 + $0x10] sm:$0x3]  ;;  %v678_v29 = vpack.c.bf16 %v33_v26, %v32_v25  ;;  %v34_v30 = vld [vmem:[%s948_s3] sm:$0xff]  ;;  %v35_v32 = vld [vmem:[%s948_s3 + $0x8] sm:$0xff] }
   0x8   :  { %661 = vmatpush3.bf16.msra.mxu0 %v660_v13  ;;  %v23_v31 = vld [vmem:[%s949_s2] sm:$0xff]  ;;  %v24_v33 = vld [vmem:[%s949_s2 + $0x8] sm:$0xff]  ;;  %v36_v34 = vld [vmem:[%s948_s3 + $0x10] sm:$0x3] }
   0x9   :  { %673 = vmatpush3.bf16.msra.mxu1 %v672_v14  ;;  %662 = vmatprep.subr.bf16.mxu0 %v695_v0  ;;  %v25_v35 = vld [vmem:[%s949_s2 + $0x10] sm:$0x3]  ;;  %v583_v13 = vld [vmem:[%s950_s5 + $0x18] sm:$0xff]   ;;  %v838_v14 = vld [vmem:[%s950_s5] sm:$0xff]  }
   0xa   :  { %674 = vmatprep.subr.bf16.mxu1 %v695_v0  ;;  %v271_v15 = vld [vmem:[%s950_s5 + $0x20] sm:$0xf]  ;;  %v579_v23 = vunpack.c.l.bf16 %v583_v13  ;;  %v580_v24 = vunpack.c.h.bf16 %v583_v13 }
   0xb   :  { %239 = vperm.xlu0 %685, %v226_v27   ;;  %v567_v27 = vunpack.c.l.bf16 %v838_v14 }
   0xc   :  { %664 = vmatpush3.bf16.msra.mxu0 %v663_v19  ;;  %v851_v19 = vld [vmem:[%s950_s5 + $0x8] sm:$0xff]  }
   0xd   :  { %676 = vmatpush3.bf16.msra.mxu1 %v675_v22  ;;  %665 = vmatprep.subr.bf16.mxu0 %v695_v0  ;;  %v582_v22 = vld [vmem:[%s950_s5 + $0x10] sm:$0xff]  }
   0xe   :  { %677 = vmatprep.subr.bf16.mxu1 %v695_v0  ;;  %v304_v0 = vunpack.c.0.s8 %v303_v61 }
  0x10   :  { %667 = vmatpush3.bf16.msra.mxu0 %v666_v28  ;;  %v828_v5 = vsub.s32 %v304_v0, %v306_v1  ;;  %v280_v28 = vunpack.c.l.bf16 %v271_v15 }
  0x11   :  { %679 = vmatpush3.bf16.msra.mxu1 %v678_v29 }
  0x13   :  { %623 = vmatmul.mubr.msk.f32.vlgmr.msra.gmra.mrb[0].mxu0 %vm45_vm1, %v34_v30  ;;  %v568_v30 = vunpack.c.h.bf16 %v838_v14 }
  0x14   :  { %648 = vmatmul.mubr.msk.f32.vlgmr.msra.gmra.mrb[0].mxu1 %vm45_vm1, %v23_v31  ;;  %625 = vmatprep.mubr.msk.f32.mxu0 %vm696_vm0, %v697_v8  ;;  %v571_v31 = vunpack.c.l.bf16 %v851_v19 }
  0x15   :  { %650 = vmatprep.mubr.msk.f32.mxu1 %vm696_vm0, %v697_v8 }
  0x17   :  { %626 = vmatmul.mubr.msk.f32.gmra.mrb[2].mxu0 %vm45_vm1, %v35_v32  ;;  %v572_v32 = vunpack.c.h.bf16 %v851_v19 }
  0x18   :  { %651 = vmatmul.mubr.msk.f32.gmra.mrb[2].mxu1 %vm45_vm1, %v24_v33  ;;  %628 = vmatprep.mubr.msk.f32.mxu0 %vm696_vm0, %v697_v8 }
  0x19   :  { %653 = vmatprep.mubr.msk.f32.mxu1 %vm696_vm0, %v697_v8 }
  0x1b   :  { %629 = vmatmul.mubr.msk.f32.gmra.mrb[4].mxu0 %vm45_vm1, %v36_v34 }
  0x1c   :  { %654 = vmatmul.mubr.msk.f32.gmra.mrb[4].mxu1 %vm45_vm1, %v25_v35  ;;  %v575_v35 = vunpack.c.l.bf16 %v582_v22 }
  0x85   :  { %v230_v3 = vpop.permute.xlu1 %229 }
  0x86   :  { %v235_v46 = vpop.permute.xlu0 %234 }
  0x8a   :  { %v240_v56 = vpop.permute.xlu0 %239 }
  0xe6   :  { %v121_v36 = vpop.f32.mrb[0].mxu0 }
  0xe7   :  { %v210_v37 = vpop.f32.mrb[0].mxu1  ;;  %v624_v38 = vpop.f32.mrb[1].mxu0 }
  0xe8   :  { %v211_v39 = vadd.f32 %v210_v37, %v121_v36  ;;  %v649_v40 = vpop.f32.mrb[1].mxu1  ;;  %v576_v36 = vunpack.c.h.bf16 %v582_v22 }
  0xe9   :  { %v866_v40 = vand.u32 2147483647, %v580_v24 }
  0xea   :  { %v126_v41 = vpop.f32.mrb[2].mxu0  ;;  %v242_v6 = vadd.f32 %v230_v3, %v211_v39  ;;  %v287_v39 = vand.u32 2147483647, %v579_v23 }
  0xeb   :  { %v215_v42 = vpop.f32.mrb[2].mxu1  ;;  %v627_v43 = vpop.f32.mrb[3].mxu0 }
  0xec   :  { %v216_v44 = vadd.f32 %v215_v42, %v126_v41  ;;  %v652_v45 = vpop.f32.mrb[3].mxu1  ;;  %v301_v7 = vcombine.high %v242_v6, %v242_v6  ;;  %v308_v8 = vrot.slane %v242_v6, %v828_v5 }
  0xee   :  { %v822_v47 = vadd.f32 %v235_v46, %v216_v44  ;;  %v131_v48 = vpop.f32.mrb[4].mxu0  ;;  %v315_v11 = vrot.slane %v301_v7, %v828_v5  ;;  %v316_v12 = vcombine.high %v308_v8, %v308_v8  ;;  %v846_v18 = vrot.slane %v308_v8, %v828_v5 }
  0xef   :  { %v220_v49 = vpop.f32.mrb[4].mxu1  ;;  %v630_v50 = vpop.f32.mrb[5].mxu0  ;;  %v873_v44 = vand.u32 2147483647, %v280_v28 }
  0xf0   :  { %v655_v51 = vpop.f32.mrb[5].mxu1  ;;  %v247_v52 = vand.u32 2147483647, %v822_v47  ;;  %v221_v55 = vadd.f32 %v220_v49, %v131_v48  ;;  %v245_v20 = vmax.f32 %v822_v47, 0.0  ;;  %v317_v25 = vcombine.high %v315_v11, %v315_v11 }
  0xf1   :  { %v338_v26 = vrot.slane %v316_v12, %v828_v5  ;;  %v331_v33 = vrot.slane %v315_v11, %v828_v5  ;;  %v346_v34 = vcombine.high %v846_v18, %v846_v18  ;;  %v494_v43 = vrot.slane %v846_v18, %v843_v17 }
  0xf2   :  { %v249_v53 = vsub.f32 0.0, %v247_v52  ;;  %v825_v57 = vadd.f32 %v240_v56, %v221_v55  ;;  %v869_v41 = vrot.slane %v317_v25, %v828_v5  ;;  %v356_v45 = vrot.slane %v822_v47, %v828_v5 }
  0xf3   :  { %v348_v42 = vcombine.high %v338_v26, %v338_v26  ;;  %v347_v51 = vcombine.high %v331_v33, %v331_v33  ;;  %v498_v52 = vrot.slane %v338_v26, %v843_v17 }
  0xf4   :  { %v251_v54 = vmul.f32 1.442695, %v249_v53  ;;  %v248_v58 = vand.u32 2147483647, %v825_v57  ;;  %v502_v53 = vrot.slane %v346_v34, %v843_v17  ;;  %v246_v61 = vmax.f32 %v825_v57, 0.0 }
  0xf5   :  { %v506_v60 = vrot.slane %v348_v42, %v843_v17  ;;  %v514_v3 = vrot.slane %v869_v41, %v843_v17 }
  0xf6   :  { %687 = vpow2.f32 %v251_v54  ;;  %v250_v59 = vsub.f32 0.0, %v248_v58  ;;  %v510_v54 = vrot.slane %v331_v33, %v843_v17 }
  0xf8   :  { %v253_v63 = vmul.f32 1.442695, %v250_v59  ;;  %v349_v59 = vcombine.high %v869_v41, %v869_v41 }
  0xfa   :  { %689 = vpow2.f32 %v253_v63  ;;  %v522_v34 = vrot.slane %v349_v59, %v843_v17 }
 0x100   :  { %v688_v2 = vpop.eup %687 }
 0x101   :  { %v255_v4 = vadd.f32 1.0, %v688_v2 }
 0x103   :  { %691 = vlog2.f32 %v255_v4 }
 0x104   :  { %v690_v9 = vpop.eup %689 }
 0x105   :  { %v256_v10 = vadd.f32 1.0, %v690_v9 }
 0x107   :  { %693 = vlog2.f32 %v256_v10 }
 0x10d   :  { %v692_v16 = vpop.eup %691 }
 0x10e   :  { %v258_v21 = vmul.f32 0.6931472, %v692_v16 }
 0x110   :  { %v261_v29 = vadd.f32 %v258_v21, %v245_v20 }
 0x111   :  { %v694_v50 = vpop.eup %693 }
 0x112   :  { %v366_v37 = vcombine.high %v261_v29, %v261_v29  ;;  %v373_v38 = vrot.slane %v261_v29, %v828_v5  ;;  %v260_v62 = vmul.f32 0.6931472, %v694_v50  ;;  %v363_v29 = vrot.slane %v356_v45, %v828_v5 }
 0x114   :  { %v380_v46 = vrot.slane %v366_v37, %v828_v5  ;;  %v381_v48 = vcombine.high %v373_v38, %v373_v38  ;;  %v389_v49 = vrot.slane %v373_v38, %v828_v5  ;;  %v262_v7 = vadd.f32 %v260_v62, %v246_v61 }
 0x116   :  { %v382_v55 = vcombine.high %v380_v46, %v380_v46  ;;  %v396_v56 = vrot.slane %v380_v46, %v828_v5  ;;  %v403_v58 = vrot.slane %v381_v48, %v828_v5  ;;  %v411_v47 = vcombine.high %v389_v49, %v389_v49 }
 0x117   :  { %v421_v14 = vrot.slane %v262_v7, %v828_v5 }
 0x118   :  { %v410_v63 = vrot.slane %v382_v55, %v828_v5  ;;  %v412_v0 = vcombine.high %v396_v56, %v396_v56  ;;  %v413_v1 = vcombine.high %v403_v58, %v403_v58  ;;  %v440_v2 = vrot.slane %v403_v58, %v843_v17 }
 0x119   :  { %v444_v4 = vrot.slane %v411_v47, %v843_v17  ;;  %v452_v6 = vrot.slane %v396_v56, %v843_v17  ;;  %v422_v23 = vcombine.high %v421_v14, %v421_v14  ;;  %v429_v28 = vrot.slane %v421_v14, %v828_v5 }
 0x11a   :  { %v414_v8 = vcombine.high %v410_v63, %v410_v63  ;;  %v448_v9 = vrot.slane %v413_v1, %v843_v17  ;;  %v456_v57 = vrot.slane %v410_v63, %v843_v17  ;;  %v460_v10 = vrot.slane %v412_v0, %v843_v17 }
 0x11b   :  { %v482_v11 = vmul.f32 %v567_v27, %v440_v2  ;;  %v483_v12 = vmul.f32 %v568_v30, %v444_v4  ;;  %v485_v13 = vmul.f32 %v572_v32, %v452_v6  ;;  %v518_v27 = vrot.slane %v347_v51, %v843_v17 }
 0x11c   :  { %v464_v15 = vrot.slane %v414_v8, %v843_v17  ;;  %v484_v16 = vmul.f32 %v571_v31, %v448_v9  ;;  %v486_v18 = vmul.f32 %v575_v35, %v456_v57  ;;  %v487_v19 = vmul.f32 %v576_v36, %v460_v10 }
 0x11d   :  { %v536_v20 = vadd.f32 %v494_v43, %v482_v11  ;;  %v537_v21 = vadd.f32 %v498_v52, %v483_v12  ;;  %v539_v22 = vadd.f32 %v506_v60, %v485_v13  ;;  %v436_v30 = vrot.slane %v422_v23, %v828_v5 }
 0x11e   :  { %v538_v24 = vadd.f32 %v502_v53, %v484_v16  ;;  %v540_v25 = vadd.f32 %v510_v54, %v486_v18  ;;  %v541_v26 = vadd.f32 %v514_v3, %v487_v19  ;;  %v488_v31 = vmul.f32 %v464_v15, %v287_v39 }
 0x11f   :  { %546 = vst.msk [vmem:[%s951_s6] sm:$0xff] %vm545_vm2, %v536_v20  ;;  %547 = vst.msk [vmem:[%s951_s6 + $0x8] sm:$0xff] %vm545_vm2, %v537_v21  ;;  %v468_v32 = vrot.slane %v429_v28, %v843_v17  ;;  %v472_v5 = vrot.slane %v436_v30, %v843_v17  ;;  %v526_v36 = vrot.slane %v363_v29, %v843_v17 }
 0x120   :  { %549 = vst.msk [vmem:[%s951_s6 + $0x18] sm:$0xff] %vm545_vm2, %v539_v22  ;;  %548 = vst.msk [vmem:[%s951_s6 + $0x10] sm:$0xff] %vm545_vm2, %v538_v24  ;;  %v542_v33 = vadd.f32 %v518_v27, %v488_v31 }
 0x121   :  { %550 = vst.msk [vmem:[%s951_s6 + $0x20] sm:$0xff] %vm545_vm2, %v540_v25  ;;  %551 = vst.msk [vmem:[%s951_s6 + $0x28] sm:$0xff] %vm545_vm2, %v541_v26  ;;  %v489_v35 = vmul.f32 %v468_v32, %v866_v40  ;;  %v490_v37 = vmul.f32 %v472_v5, %v873_v44 }
 0x122   :  { %552 = vst.msk [vmem:[%s951_s6 + $0x30] sm:$0xff] %vm545_vm2, %v542_v33 }
 0x123   :  { %v543_v38 = vadd.f32 %v522_v34, %v489_v35  ;;  %v544_v39 = vadd.f32 %v526_v36, %v490_v37 }
 0x125   :  { %553 = vst.msk [vmem:[%s951_s6 + $0x38] sm:$0xff] %vm545_vm2, %v543_v38  ;;  %554 = vst.msk [vmem:[%s951_s6 + $0x40] sm:$0xff] %vm545_vm2, %v544_v39 }

</bundles_post_ra>
